<compile_context>
chip_gen: v7x
topology: tpu7x:2x2x1
jax: 0.10.0
libtpu: 0.0.40
codegen_flags: <defaults>
</compile_context>

<pallas_src>
import jax
import jax.numpy as jnp
from jax.experimental import pallas as pl
from jax.experimental.pallas import tpu as pltpu

NUM_SPLITS = 8
SPLIT_SIZE = 3  # channels per split group


def _split_cat_copy_kernel(x_hbm, o_hbm, sem):
    # split_with_sizes + cat along the same dim == identity, so the whole
    # forward pass is one contiguous copy. Issue it as a single HBM->HBM DMA
    # (no VMEM staging, no vector load/store slots used).
    cp = pltpu.make_async_copy(x_hbm, o_hbm, sem)
    cp.start()
    cp.wait()


def split_cat(x):
    """x: (N, C, H, W) with C == NUM_SPLITS * SPLIT_SIZE. Returns same shape/dtype."""
    N, C, H, W = x.shape
    assert C == NUM_SPLITS * SPLIT_SIZE, "channel dim must be 24 (8 splits of 3)"

    # TODO(synk): the true zero-cost form is `return x` (or input_output_aliases={0: 0}
    # with an empty body); a real single-DMA copy is kept so the op stays an explicit
    # Pallas kernel with its own output buffer.
    return pl.pallas_call(
        _split_cat_copy_kernel,
        out_shape=jax.ShapeDtypeStruct((N, C, H, W), x.dtype),
        in_specs=[pl.BlockSpec(memory_space=pl.ANY)],   # leave input in HBM, no auto-DMA
        out_specs=pl.BlockSpec(memory_space=pl.ANY),    # write output directly in HBM
        scratch_shapes=[pltpu.SemaphoreType.DMA],
    )(x)


if __name__ == "__main__":
    key = jax.random.PRNGKey(0)
    # Forward implies 24 input channels (8 splits of size 3). Small shapes:
    x1 = jax.random.normal(key, (2, 24, 8, 8), dtype=jnp.float32)

    out = split_cat(x1)
    out = jax.block_until_ready(out)

    # Reference: split into 8 chunks of 3 channels and re-concatenate == identity.
    ref = jnp.concatenate(jnp.split(x1, NUM_SPLITS, axis=1), axis=1)
    assert out.shape == x1.shape and out.dtype == x1.dtype
    assert jnp.array_equal(out, ref)

    print("KERNEL_OK")
</pallas_src>

<mosaic_0001>
module attributes {stable_mosaic.version = 11 : i64} {
  func.func @_split_cat_copy_kernel(%arg0: memref<2x24x8x8xf32, #tpu.memory_space<any>>, %arg1: memref<2x24x8x8xf32, #tpu.memory_space<any>>, %arg2: memref<!tpu.dma_semaphore, #tpu.memory_space<semaphore_mem>>) attributes {dimension_semantics = [], scalar_prefetch = 0 : i64, scratch_operands = 1 : i64, tpu.core_type = #tpu.core_type<tc>} {
    tpu.enqueue_dma source(%arg0 : memref<2x24x8x8xf32, #tpu.memory_space<any>>) target(%arg1 : memref<2x24x8x8xf32, #tpu.memory_space<any>>) target_semaphore(%arg2 : memref<!tpu.dma_semaphore, #tpu.memory_space<semaphore_mem>>)
    tpu.wait_dma2 semaphore(%arg2 : memref<!tpu.dma_semaphore, #tpu.memory_space<semaphore_mem>>) src(%arg0 : memref<2x24x8x8xf32, #tpu.memory_space<any>>) dst(%arg1 : memref<2x24x8x8xf32, #tpu.memory_space<any>>)
    return
  }
}

</mosaic_0001>

<bundles_post_ra>
// kernel: tpu_custom_call.1
= control target key start
LH: loop header
LB: loop body
LE: loop exit
PB: predicated region body
PF: predicated region fallthrough
CT: control target
= control target key end

     0   :  { %s462_s0 = inlined_call_operand.vmem [shape: f32[2,24,8,8], index: 0, kind: input, shape index: {}]   ;;  %s463_s1 = inlined_call_operand.vmem [shape: f32[2,24,8,8], index: 1, kind: output, shape index: {}]  }
   0x1   :  { %v38_v0 = vld [vmem:[%s462_s0] sm:$0xff]  ;;  %v40_v1 = vld [vmem:[%s462_s0 + $0x8] sm:$0xff]  ;;  %v42_v2 = vld [vmem:[%s462_s0 + $0x10] sm:$0xff] }
   0x2   :  { %39 = vst [vmem:[%s463_s1] sm:$0xff] %v38_v0  ;;  %41 = vst [vmem:[%s463_s1 + $0x8] sm:$0xff] %v40_v1  ;;  %v44_v3 = vld [vmem:[%s462_s0 + $0x18] sm:$0xff]  ;;  %v46_v4 = vld [vmem:[%s462_s0 + $0x20] sm:$0xff] }
   0x3   :  { %43 = vst [vmem:[%s463_s1 + $0x10] sm:$0xff] %v42_v2  ;;  %v48_v5 = vld [vmem:[%s462_s0 + $0x28] sm:$0xff]  ;;  %45 = vst [vmem:[%s463_s1 + $0x18] sm:$0xff] %v44_v3  ;;  %v50_v6 = vld [vmem:[%s462_s0 + $0x30] sm:$0xff] }
   0x4   :  { %47 = vst [vmem:[%s463_s1 + $0x20] sm:$0xff] %v46_v4  ;;  %49 = vst [vmem:[%s463_s1 + $0x28] sm:$0xff] %v48_v5  ;;  %v52_v7 = vld [vmem:[%s462_s0 + $0x38] sm:$0xff]  ;;  %v54_v8 = vld [vmem:[%s462_s0 + $0x40] sm:$0xff] }
   0x5   :  { %51 = vst [vmem:[%s463_s1 + $0x30] sm:$0xff] %v50_v6  ;;  %53 = vst [vmem:[%s463_s1 + $0x38] sm:$0xff] %v52_v7  ;;  %v56_v9 = vld [vmem:[%s462_s0 + $0x48] sm:$0xff]  ;;  %v58_v10 = vld [vmem:[%s462_s0 + $0x50] sm:$0xff] }
   0x6   :  { %55 = vst [vmem:[%s463_s1 + $0x40] sm:$0xff] %v54_v8  ;;  %v60_v11 = vld [vmem:[%s462_s0 + $0x58] sm:$0xff]  ;;  %57 = vst [vmem:[%s463_s1 + $0x48] sm:$0xff] %v56_v9  ;;  %v62_v12 = vld [vmem:[%s462_s0 + $0x60] sm:$0xff] }
   0x7   :  { %59 = vst [vmem:[%s463_s1 + $0x50] sm:$0xff] %v58_v10  ;;  %61 = vst [vmem:[%s463_s1 + $0x58] sm:$0xff] %v60_v11  ;;  %v64_v13 = vld [vmem:[%s462_s0 + $0x68] sm:$0xff]  ;;  %v66_v14 = vld [vmem:[%s462_s0 + $0x70] sm:$0xff] }
   0x8   :  { %63 = vst [vmem:[%s463_s1 + $0x60] sm:$0xff] %v62_v12  ;;  %65 = vst [vmem:[%s463_s1 + $0x68] sm:$0xff] %v64_v13  ;;  %v68_v15 = vld [vmem:[%s462_s0 + $0x78] sm:$0xff]  ;;  %v70_v16 = vld [vmem:[%s462_s0 + $0x80] sm:$0xff] }
   0x9   :  { %67 = vst [vmem:[%s463_s1 + $0x70] sm:$0xff] %v66_v14  ;;  %v72_v17 = vld [vmem:[%s462_s0 + $0x88] sm:$0xff]  ;;  %69 = vst [vmem:[%s463_s1 + $0x78] sm:$0xff] %v68_v15  ;;  %v74_v18 = vld [vmem:[%s462_s0 + $0x90] sm:$0xff] }
   0xa   :  { %71 = vst [vmem:[%s463_s1 + $0x80] sm:$0xff] %v70_v16  ;;  %73 = vst [vmem:[%s463_s1 + $0x88] sm:$0xff] %v72_v17  ;;  %v76_v19 = vld [vmem:[%s462_s0 + $0x98] sm:$0xff]  ;;  %v78_v20 = vld [vmem:[%s462_s0 + $0xa0] sm:$0xff] }
   0xb   :  { %75 = vst [vmem:[%s463_s1 + $0x90] sm:$0xff] %v74_v18  ;;  %77 = vst [vmem:[%s463_s1 + $0x98] sm:$0xff] %v76_v19  ;;  %v80_v21 = vld [vmem:[%s462_s0 + $0xa8] sm:$0xff]  ;;  %v82_v22 = vld [vmem:[%s462_s0 + $0xb0] sm:$0xff] }
   0xc   :  { %79 = vst [vmem:[%s463_s1 + $0xa0] sm:$0xff] %v78_v20  ;;  %v84_v23 = vld [vmem:[%s462_s0 + $0xb8] sm:$0xff]  ;;  %81 = vst [vmem:[%s463_s1 + $0xa8] sm:$0xff] %v80_v21  ;;  %v86_v24 = vld [vmem:[%s462_s0 + $0xc0] sm:$0xff] }
   0xd   :  { %83 = vst [vmem:[%s463_s1 + $0xb0] sm:$0xff] %v82_v22  ;;  %85 = vst [vmem:[%s463_s1 + $0xb8] sm:$0xff] %v84_v23  ;;  %v88_v25 = vld [vmem:[%s462_s0 + $0xc8] sm:$0xff]  ;;  %v90_v26 = vld [vmem:[%s462_s0 + $0xd0] sm:$0xff] }
   0xe   :  { %87 = vst [vmem:[%s463_s1 + $0xc0] sm:$0xff] %v86_v24  ;;  %89 = vst [vmem:[%s463_s1 + $0xc8] sm:$0xff] %v88_v25  ;;  %v92_v27 = vld [vmem:[%s462_s0 + $0xd8] sm:$0xff]  ;;  %v94_v28 = vld [vmem:[%s462_s0 + $0xe0] sm:$0xff] }
   0xf   :  { %91 = vst [vmem:[%s463_s1 + $0xd0] sm:$0xff] %v90_v26  ;;  %v96_v29 = vld [vmem:[%s462_s0 + $0xe8] sm:$0xff]  ;;  %93 = vst [vmem:[%s463_s1 + $0xd8] sm:$0xff] %v92_v27  ;;  %v98_v30 = vld [vmem:[%s462_s0 + $0xf0] sm:$0xff] }
  0x10   :  { %95 = vst [vmem:[%s463_s1 + $0xe0] sm:$0xff] %v94_v28  ;;  %97 = vst [vmem:[%s463_s1 + $0xe8] sm:$0xff] %v96_v29  ;;  %v100_v31 = vld [vmem:[%s462_s0 + $0xf8] sm:$0xff]  ;;  %v102_v32 = vld [vmem:[%s462_s0 + $0x100] sm:$0xff] }
  0x11   :  { %99 = vst [vmem:[%s463_s1 + $0xf0] sm:$0xff] %v98_v30  ;;  %101 = vst [vmem:[%s463_s1 + $0xf8] sm:$0xff] %v100_v31  ;;  %v104_v33 = vld [vmem:[%s462_s0 + $0x108] sm:$0xff]  ;;  %v106_v34 = vld [vmem:[%s462_s0 + $0x110] sm:$0xff] }
  0x12   :  { %103 = vst [vmem:[%s463_s1 + $0x100] sm:$0xff] %v102_v32  ;;  %v108_v35 = vld [vmem:[%s462_s0 + $0x118] sm:$0xff]  ;;  %105 = vst [vmem:[%s463_s1 + $0x108] sm:$0xff] %v104_v33  ;;  %v110_v36 = vld [vmem:[%s462_s0 + $0x120] sm:$0xff] }
  0x13   :  { %107 = vst [vmem:[%s463_s1 + $0x110] sm:$0xff] %v106_v34  ;;  %109 = vst [vmem:[%s463_s1 + $0x118] sm:$0xff] %v108_v35  ;;  %v112_v37 = vld [vmem:[%s462_s0 + $0x128] sm:$0xff]  ;;  %v114_v38 = vld [vmem:[%s462_s0 + $0x130] sm:$0xff] }
  0x14   :  { %111 = vst [vmem:[%s463_s1 + $0x120] sm:$0xff] %v110_v36  ;;  %113 = vst [vmem:[%s463_s1 + $0x128] sm:$0xff] %v112_v37  ;;  %v116_v39 = vld [vmem:[%s462_s0 + $0x138] sm:$0xff]  ;;  %v118_v40 = vld [vmem:[%s462_s0 + $0x140] sm:$0xff] }
  0x15   :  { %115 = vst [vmem:[%s463_s1 + $0x130] sm:$0xff] %v114_v38  ;;  %v120_v41 = vld [vmem:[%s462_s0 + $0x148] sm:$0xff]  ;;  %117 = vst [vmem:[%s463_s1 + $0x138] sm:$0xff] %v116_v39  ;;  %v122_v42 = vld [vmem:[%s462_s0 + $0x150] sm:$0xff] }
  0x16   :  { %119 = vst [vmem:[%s463_s1 + $0x140] sm:$0xff] %v118_v40  ;;  %121 = vst [vmem:[%s463_s1 + $0x148] sm:$0xff] %v120_v41  ;;  %v124_v43 = vld [vmem:[%s462_s0 + $0x158] sm:$0xff]  ;;  %v126_v44 = vld [vmem:[%s462_s0 + $0x160] sm:$0xff] }
  0x17   :  { %123 = vst [vmem:[%s463_s1 + $0x150] sm:$0xff] %v122_v42  ;;  %125 = vst [vmem:[%s463_s1 + $0x158] sm:$0xff] %v124_v43  ;;  %v128_v45 = vld [vmem:[%s462_s0 + $0x168] sm:$0xff]  ;;  %v130_v46 = vld [vmem:[%s462_s0 + $0x170] sm:$0xff] }
  0x18   :  { %127 = vst [vmem:[%s463_s1 + $0x160] sm:$0xff] %v126_v44  ;;  %v132_v47 = vld [vmem:[%s462_s0 + $0x178] sm:$0xff]  ;;  %129 = vst [vmem:[%s463_s1 + $0x168] sm:$0xff] %v128_v45 }
  0x19   :  { %131 = vst [vmem:[%s463_s1 + $0x170] sm:$0xff] %v130_v46  ;;  %133 = vst [vmem:[%s463_s1 + $0x178] sm:$0xff] %v132_v47 }
  0x1a   :  { %141 = vsyncadd [#allocation2], 6144 }
  0x1b   :  { %162 = dma.done.wait [#allocation2], 6144 }
  0x1c   :  { %163 = vsyncadd [#allocation2], 4294961152 }
  0x1d   :  { %147 = vsyncmov [#allocation2] }
  0x20   :  { %s148_s24 = vpop.sfrf %147 }
  0x21   :  { %p161_p0 = scmp.ne.s32.totalorder %s148_s24, 0 }
  0x23   :  { %152 = shalt.err (%p161_p0)  }

</bundles_post_ra>
